<compile_context>
chip_gen: v5e
topology: v5e:2x2
jax: 0.10.0
libtpu: 0.0.40
codegen_flags: <defaults>
</compile_context>

<pallas_src>
import jax
import jax.numpy as jnp
from jax.experimental import pallas as pl
from jax.experimental.pallas import tpu as pltpu


def _cdiv(a, b):
    return -(-a // b)


def _round_up(a, b):
    return _cdiv(a, b) * b


def _make_kernel(n_classes, k_pack, has_weight, has_ignore):
    """Build the kernel body for a given (C, packing, weight?, ignore?) config."""
    # In the packed layout each valid sample contributes n_classes ones to the
    # per-lane mask; in the unpacked layout the mask is already per-sample.
    count_scale = 1.0 / float(n_classes if k_pack > 1 else 1)

    def kernel(*refs):
        i = 0
        probs_ref = refs[i]; i += 1
        tgt_ref = refs[i]; i += 1
        w_ref = None
        if has_weight:
            w_ref = refs[i]; i += 1
        lsum_ref = refs[i]; i += 1
        msum_ref = None
        if has_ignore:
            msum_ref = refs[i]; i += 1
        lacc = refs[i]; i += 1
        macc = refs[i] if has_ignore else None

        t = pl.program_id(1)

        @pl.when(t == 0)
        def _init():
            lacc[...] = jnp.zeros_like(lacc)
            if has_ignore:
                macc[...] = jnp.zeros_like(macc)

        probs = probs_ref[...].astype(jnp.float32)        # (TR, PC)
        tgt = tgt_ref[...].astype(jnp.int32)              # (TR, PC) or (TR, 1)

        pc = probs.shape[-1]
        # Tiny (1, PC) class pattern; sublane-broadcast in the compare below.
        lane = jax.lax.broadcasted_iota(jnp.int32, (1, pc), 1)
        if k_pack > 1:
            # C divides 128 here, hence it is a power of two.
            class_pattern = jnp.bitwise_and(lane, n_classes - 1)
        else:
            class_pattern = lane                           # PC == C
        onehot = tgt == class_pattern                      # (TR, PC)

        diff = jnp.where(onehot, probs - 1.0, probs)
        sq = diff * diff                                   # (TR, PC)

        if has_ignore:
            # -1 marks ignored / padded samples.
            mask = (tgt >= 0).astype(jnp.float32)          # (TR, PC) or (TR, 1)

        if has_weight:
            if k_pack > 1:
                # weight[target] expanded to every lane of the sample's group.
                # O(C) selects per lane: acceptable for C <= 16 (wrapper forces
                # the unpacked path for weighted C >= 32).
                w_exp = jnp.zeros_like(probs)
                for ci in range(n_classes):
                    w_exp = jnp.where(tgt == ci, w_ref[:, ci:ci + 1], w_exp)
            else:
                # One row == one sample: pick the weight via the one-hot row.
                w_exp = jnp.sum(onehot.astype(jnp.float32) * w_ref[...],
                                axis=-1, keepdims=True)    # (TR, 1)
            # Ignored / padded samples have w_exp == 0, so no extra mask mul.
            contrib = sq * w_exp
        elif has_ignore:
            contrib = sq * mask
        else:
            # Padded rows have probs == 0 and onehot == 0 -> sq == 0 already.
            contrib = sq

        # Vector accumulators: lanes stay independent; cross-lane reduce only
        # happens once, in the epilogue.
        lacc[...] += jnp.sum(contrib, axis=0, keepdims=True)
        if has_ignore:
            macc[...] += jnp.sum(mask, axis=0, keepdims=True)

        @pl.when(t == pl.num_programs(1) - 1)
        def _finalize():
            lsum_ref[...] = jnp.sum(lacc[...], keepdims=True)
            if has_ignore:
                msum_ref[...] = jnp.sum(macc[...], keepdims=True) * count_scale

    return kernel


def mse_probability_loss(probs, target, weight=None, ignore_index=None):
    """Pallas implementation of CompatibleMSEProbabilityLoss.forward."""
    probs = jnp.asarray(probs)
    target = jnp.asarray(target)

    if probs.ndim != 2:
        # "Compatible" layout: class dim at axis 1; flatten batch/spatial dims.
        c0 = probs.shape[1]
        probs = jnp.moveaxis(probs, 1, -1).reshape(-1, c0)
        target = jnp.reshape(target, (-1,))

    n, c = probs.shape
    has_weight = weight is not None
    has_ignore = ignore_index is not None

    # Remap ignored targets to the -1 sentinel (also used for padded rows).
    t32 = target.astype(jnp.int32)
    if has_ignore:
        t32 = jnp.where(t32 == jnp.int32(ignore_index), jnp.int32(-1), t32)

    # Lane packing: k = 128 // C samples side by side so the last dim is 128.
    # Skip packing for weighted losses with C >= 32: there the per-lane C-way
    # weight select chain dominates, while the unpacked path looks the weight
    # up with an O(1)/element one-hot dot.
    if c < 128 and 128 % c == 0 and not (has_weight and c >= 32):
        k = 128 // c
    else:
        k = 1
    pc = k * c

    n_split = 2                        # leading "parallel" axis (both TCs on v7x)
    max_tile_rows = 8192
    stream_budget = 20 * 1024 * 1024   # bytes for double-buffered streamed inputs
    if k > 1:
        row_bytes = pc * 4 + pc                              # f32 probs + int8 target
    else:
        # Account for Mosaic lane padding of narrow arrays in VMEM.
        row_bytes = _round_up(c, 128) * 4 + 128 * 4          # probs + padded i32 target
    cap = (stream_budget // (2 * row_bytes)) // 32 * 32
    cap = max(32, min(max_tile_rows, cap))

    rows = _cdiv(n, k)
    t_steps = max(1, _cdiv(rows, n_split * cap))
    tile_rows = _round_up(_cdiv(rows, n_split * t_steps), 32)   # 32: int8 sublane packing
    rows_final = n_split * t_steps * tile_rows
    n_final = rows_final * k

    pad = n_final - n
    if pad:
        probs = jnp.pad(probs, ((0, pad), (0, 0)))
        t32 = jnp.pad(t32, (0, pad), constant_values=-1)

    probs_p = probs.reshape(rows_final, pc)     # free reshape (contiguous)

    if k > 1:
        # Per-element target id, lane-dense and compact (int8); -1 = ignore/pad.
        # (C <= 64 on this path so the id always fits in int8.)
        tgt_in = jnp.repeat(t32.astype(jnp.int8), c).reshape(rows_final, pc)
        tgt_cols = pc
    else:
        tgt_in = t32.reshape(rows_final, 1)
        tgt_cols = 1

    inputs = [probs_p, tgt_in]
    in_specs = [
        pl.BlockSpec((tile_rows, pc), lambda o, t: (o * t_steps + t, 0)),
        pl.BlockSpec((tile_rows, tgt_cols), lambda o, t: (o * t_steps + t, 0)),
    ]
    if has_weight:
        inputs.append(jnp.asarray(weight, jnp.float32).reshape(1, c))
        in_specs.append(pl.BlockSpec((1, c), lambda o, t: (0, 0)))   # resident

    kernel = _make_kernel(c, k, has_weight, has_ignore)

    part_shape = jax.ShapeDtypeStruct((n_split, 1, 1), jnp.float32)
    part_spec = pl.BlockSpec((None, 1, 1), lambda o, t: (o, 0, 0))
    scratch = [pltpu.VMEM((1, pc), jnp.float32)]                 # loss accumulator
    if has_ignore:
        out_shape = (part_shape, part_shape)
        out_specs = (part_spec, part_spec)
        scratch.append(pltpu.VMEM((1, pc if k > 1 else 1), jnp.float32))  # count acc
    else:
        out_shape = part_shape
        out_specs = part_spec

    result = pl.pallas_call(
        kernel,
        out_shape=out_shape,
        grid_spec=pltpu.PrefetchScalarGridSpec(
            num_scalar_prefetch=0,
            grid=(n_split, t_steps),
            in_specs=in_specs,
            out_specs=out_specs,
            scratch_shapes=scratch,
        ),
        compiler_params=pltpu.CompilerParams(
            dimension_semantics=("parallel", "arbitrary"),
            vmem_limit_bytes=32 * 1024 * 1024,
        ),
    )(*inputs)

    if has_ignore:
        loss_parts, cnt_parts = result
        return jnp.sum(loss_parts) / jnp.maximum(jnp.sum(cnt_parts), 1.0)
    # No ignore_index: padded rows self-cancel; denominator is the static N.
    return jnp.sum(result) / float(max(n, 1))


class CompatibleMSEProbabilityLoss:
    """JAX/Pallas mirror of the PyTorch module."""

    def __init__(self, weight=None, ignore_index=None):
        self.weight = weight
        self.ignore_index = ignore_index

    def __call__(self, probs, target):
        return mse_probability_loss(probs, target, self.weight, self.ignore_index)


def _reference_loss(probs, target, weight, ignore_index):
    """Pure-JAX reference of the same semantics."""
    probs = jnp.asarray(probs)
    target = jnp.asarray(target)
    if probs.ndim != 2:
        c0 = probs.shape[1]
        probs = jnp.moveaxis(probs, 1, -1).reshape(-1, c0)
        target = jnp.reshape(target, (-1,))
    c = probs.shape[1]
    onehot = jax.nn.one_hot(target, c, dtype=probs.dtype)
    per = jnp.sum((probs - onehot) ** 2, axis=1)
    w = weight[target] if weight is not None else jnp.ones_like(per)
    if ignore_index is not None:
        mask = (target != ignore_index).astype(probs.dtype)
    else:
        mask = jnp.ones_like(per)
    return jnp.sum(per * w * mask) / jnp.maximum(jnp.sum(mask), 1.0)


if __name__ == "__main__":
    key = jax.random.PRNGKey(0)
    keys = jax.random.split(key, 8)

    # --- main demo shapes: (N, C) = (16, 8), packed lane-dense path -------------
    N, C = 16, 8
    probs = jax.nn.softmax(jax.random.normal(keys[0], (N, C), jnp.float32), axis=-1)
    target = jax.random.randint(keys[1], (N,), 0, C, jnp.int32)
    weight = jnp.linspace(0.5, 1.5, C, dtype=jnp.float32)

    out = jax.block_until_ready(
        CompatibleMSEProbabilityLoss(weight=weight, ignore_index=3)(probs, target))
    ref = _reference_loss(probs, target, weight, 3)
    assert jnp.allclose(out, ref, rtol=1e-5, atol=1e-6), (out, ref)

    # plain mean path (no weight, no ignore_index) -> single-output kernel
    out2 = jax.block_until_ready(CompatibleMSEProbabilityLoss()(probs, target))
    ref2 = _reference_loss(probs, target, None, None)
    assert jnp.allclose(out2, ref2, rtol=1e-5, atol=1e-6), (out2, ref2)

    # weight but no ignore_index (single-output, weighted, packed)
    out2b = jax.block_until_ready(
        CompatibleMSEProbabilityLoss(weight=weight)(probs, target))
    ref2b = _reference_loss(probs, target, weight, None)
    assert jnp.allclose(out2b, ref2b, rtol=1e-5, atol=1e-6), (out2b, ref2b)

    # --- ragged N, C that does not divide 128 (unpacked fallback + padding) -----
    N2, C2 = 19, 12
    probs2 = jax.nn.softmax(jax.random.normal(keys[2], (N2, C2), jnp.float32), axis=-1)
    target2 = jax.random.randint(keys[3], (N2,), 0, C2, jnp.int32)
    weight2 = jnp.linspace(0.25, 2.0, C2, dtype=jnp.float32)
    out3 = jax.block_until_ready(
        CompatibleMSEProbabilityLoss(weight=weight2, ignore_index=2)(probs2, target2))
    ref3 = _reference_loss(probs2, target2, weight2, 2)
    assert jnp.allclose(out3, ref3, rtol=1e-5, atol=1e-6), (out3, ref3)

    # --- "compatible" higher-rank layout: (B, C, H, W) ---------------------------
    B, C4, H, W = 2, 4, 3, 3
    probs4 = jax.nn.softmax(jax.random.normal(keys[4], (B, C4, H, W), jnp.float32), axis=1)
    target4 = jax.random.randint(keys[5], (B, H, W), 0, C4, jnp.int32)
    out4 = jax.block_until_ready(
        CompatibleMSEProbabilityLoss(ignore_index=1)(probs4, target4))
    ref4 = _reference_loss(probs4, target4, None, 1)
    assert jnp.allclose(out4, ref4, rtol=1e-5, atol=1e-6), (out4, ref4)

    # --- weighted with C >= 32: cost model forces the unpacked layout -----------
    N5, C5 = 40, 32
    probs5 = jax.nn.softmax(jax.random.normal(keys[6], (N5, C5), jnp.float32), axis=-1)
    target5 = jax.random.randint(keys[7], (N5,), 0, C5, jnp.int32)
    weight5 = jnp.linspace(0.5, 1.5, C5, dtype=jnp.float32)
    out5 = jax.block_until_ready(
        CompatibleMSEProbabilityLoss(weight=weight5)(probs5, target5))
    ref5 = _reference_loss(probs5, target5, weight5, None)
    assert jnp.allclose(out5, ref5, rtol=1e-5, atol=1e-6), (out5, ref5)

    print("KERNEL_OK")
</pallas_src>

<mosaic_0001>
module attributes {stable_mosaic.version = 11 : i64} {
  func.func @kernel(%arg0: i32, %arg1: i32, %arg2: memref<32x128xf32, #tpu.memory_space<vmem>>, %arg3: memref<32x128xi8, #tpu.memory_space<vmem>>, %arg4: memref<1x8xf32, #tpu.memory_space<vmem>>, %arg5: memref<1x1x1xf32, #tpu.memory_space<vmem>>, %arg6: memref<1x1x1xf32, #tpu.memory_space<vmem>>, %arg7: memref<1x128xf32, #tpu.memory_space<vmem>>, %arg8: memref<1x128xf32, #tpu.memory_space<vmem>>) attributes {dimension_semantics = [#tpu.dimension_semantics<parallel>, #tpu.dimension_semantics<arbitrary>], iteration_bounds = array<i64: 2, 1>, scalar_prefetch = 0 : i64, scratch_operands = 2 : i64, tpu.core_type = #tpu.core_type<tc>, window_params = [{transform_indices = @transform_0, window_bounds = array<i64: 32, 128>}, {transform_indices = @transform_1, window_bounds = array<i64: 32, 128>}, {pipeline_mode = #tpu.pipeline_mode<synchronous>, transform_indices = @transform_2, window_bounds = array<i64: 1, 8>}, {transform_indices = @transform_3, window_bounds = array<i64: 1, 1, 1>}, {transform_indices = @transform_4, window_bounds = array<i64: 1, 1, 1>}]} {
    %c0_i32 = arith.constant 0 : i32
    %0 = arith.cmpi eq, %arg1, %c0_i32 : i32
    %1 = arith.extui %0 : i1 to i32
    %c0_i32_0 = arith.constant 0 : i32
    %2 = arith.cmpi ne, %1, %c0_i32_0 : i32
    scf.if %2 {
      %cst_29 = arith.constant 0.000000e+00 : f32
      %82 = vector.broadcast %cst_29 : f32 to vector<1x128xf32>
      %c0_30 = arith.constant 0 : index
      %c0_31 = arith.constant 0 : index
      %83 = vector.load %arg7[%c0_30, %c0_31] : memref<1x128xf32, #tpu.memory_space<vmem>>, vector<1x128xf32>
      tpu.vector_store %arg7[%c0_30, %c0_31], %82 {strides = array<i32>} : memref<1x128xf32, #tpu.memory_space<vmem>>, vector<1x128xf32>,
      %cst_32 = arith.constant 0.000000e+00 : f32
      %84 = vector.broadcast %cst_32 : f32 to vector<1x128xf32>
      %c0_33 = arith.constant 0 : index
      %c0_34 = arith.constant 0 : index
      %85 = vector.load %arg8[%c0_33, %c0_34] : memref<1x128xf32, #tpu.memory_space<vmem>>, vector<1x128xf32>
      tpu.vector_store %arg8[%c0_33, %c0_34], %84 {strides = array<i32>} : memref<1x128xf32, #tpu.memory_space<vmem>>, vector<1x128xf32>,
    } else {
    }
    %c0 = arith.constant 0 : index
    %c0_1 = arith.constant 0 : index
    %3 = vector.load %arg2[%c0, %c0_1] : memref<32x128xf32, #tpu.memory_space<vmem>>, vector<32x128xf32>
    %c0_2 = arith.constant 0 : index
    %c0_3 = arith.constant 0 : index
    %4 = vector.load %arg3[%c0_2, %c0_3] : memref<32x128xi8, #tpu.memory_space<vmem>>, vector<32x128xi8>
    %5 = arith.extsi %4 : vector<32x128xi8> to vector<32x128xi32>
    %6 = tpu.iota {dimensions = array<i32: 1>} : vector<1x128xi32>
    %c7_i32 = arith.constant 7 : i32
    %7 = vector.broadcast %c7_i32 : i32 to vector<1x128xi32>
    %8 = arith.andi %6, %7 : vector<1x128xi32>
    %9 = vector.broadcast %8 : vector<1x128xi32> to vector<32x128xi32>
    %10 = arith.cmpi eq, %5, %9 : vector<32x128xi32>
    %cst = arith.constant 1.000000e+00 : f32
    %11 = vector.broadcast %cst : f32 to vector<32x128xf32>
    %12 = arith.subf %3, %11 : vector<32x128xf32>
    %13 = arith.select %10, %12, %3 : vector<32x128xi1>, vector<32x128xf32>
    %14 = arith.mulf %13, %13 : vector<32x128xf32>
    %c0_i32_4 = arith.constant 0 : i32
    %15 = vector.broadcast %c0_i32_4 : i32 to vector<32x128xi32>
    %16 = arith.cmpi sge, %5, %15 : vector<32x128xi32>
    %17 = arith.extui %16 : vector<32x128xi1> to vector<32x128xi32>
    %18 = arith.sitofp %17 : vector<32x128xi32> to vector<32x128xf32>
    %cst_5 = arith.constant 0.000000e+00 : f32
    %19 = vector.broadcast %cst_5 : f32 to vector<32x128xf32>
    %c0_i32_6 = arith.constant 0 : i32
    %20 = vector.broadcast %c0_i32_6 : i32 to vector<32x128xi32>
    %21 = arith.cmpi eq, %5, %20 : vector<32x128xi32>
    %c0_7 = arith.constant 0 : index
    %c0_8 = arith.constant 0 : index
    %22 = vector.load %arg4[%c0_7, %c0_8] : memref<1x8xf32, #tpu.memory_space<vmem>>, vector<1x1xf32>
    %23 = vector.shape_cast %22 : vector<1x1xf32> to vector<1x1xf32>
    %24 = vector.broadcast %23 : vector<1x1xf32> to vector<32x128xf32>
    %25 = arith.select %21, %24, %19 : vector<32x128xi1>, vector<32x128xf32>
    %c1_i32 = arith.constant 1 : i32
    %26 = vector.broadcast %c1_i32 : i32 to vector<32x128xi32>
    %27 = arith.cmpi eq, %5, %26 : vector<32x128xi32>
    %c0_9 = arith.constant 0 : index
    %c1 = arith.constant 1 : index
    %28 = vector.load %arg4[%c0_9, %c1] : memref<1x8xf32, #tpu.memory_space<vmem>>, vector<1x1xf32>
    %29 = vector.shape_cast %28 : vector<1x1xf32> to vector<1x1xf32>
    %30 = vector.broadcast %29 : vector<1x1xf32> to vector<32x128xf32>
    %31 = arith.select %27, %30, %25 : vector<32x128xi1>, vector<32x128xf32>
    %c2_i32 = arith.constant 2 : i32
    %32 = vector.broadcast %c2_i32 : i32 to vector<32x128xi32>
    %33 = arith.cmpi eq, %5, %32 : vector<32x128xi32>
    %c0_10 = arith.constant 0 : index
    %c2 = arith.constant 2 : index
    %34 = vector.load %arg4[%c0_10, %c2] : memref<1x8xf32, #tpu.memory_space<vmem>>, vector<1x1xf32>
    %35 = vector.shape_cast %34 : vector<1x1xf32> to vector<1x1xf32>
    %36 = vector.broadcast %35 : vector<1x1xf32> to vector<32x128xf32>
    %37 = arith.select %33, %36, %31 : vector<32x128xi1>, vector<32x128xf32>
    %c3_i32 = arith.constant 3 : i32
    %38 = vector.broadcast %c3_i32 : i32 to vector<32x128xi32>
    %39 = arith.cmpi eq, %5, %38 : vector<32x128xi32>
    %c0_11 = arith.constant 0 : index
    %c3 = arith.constant 3 : index
    %40 = vector.load %arg4[%c0_11, %c3] : memref<1x8xf32, #tpu.memory_space<vmem>>, vector<1x1xf32>
    %41 = vector.shape_cast %40 : vector<1x1xf32> to vector<1x1xf32>
    %42 = vector.broadcast %41 : vector<1x1xf32> to vector<32x128xf32>
    %43 = arith.select %39, %42, %37 : vector<32x128xi1>, vector<32x128xf32>
    %c4_i32 = arith.constant 4 : i32
    %44 = vector.broadcast %c4_i32 : i32 to vector<32x128xi32>
    %45 = arith.cmpi eq, %5, %44 : vector<32x128xi32>
    %c0_12 = arith.constant 0 : index
    %c4 = arith.constant 4 : index
    %46 = vector.load %arg4[%c0_12, %c4] : memref<1x8xf32, #tpu.memory_space<vmem>>, vector<1x1xf32>
    %47 = vector.shape_cast %46 : vector<1x1xf32> to vector<1x1xf32>
    %48 = vector.broadcast %47 : vector<1x1xf32> to vector<32x128xf32>
    %49 = arith.select %45, %48, %43 : vector<32x128xi1>, vector<32x128xf32>
    %c5_i32 = arith.constant 5 : i32
    %50 = vector.broadcast %c5_i32 : i32 to vector<32x128xi32>
    %51 = arith.cmpi eq, %5, %50 : vector<32x128xi32>
    %c0_13 = arith.constant 0 : index
    %c5 = arith.constant 5 : index
    %52 = vector.load %arg4[%c0_13, %c5] : memref<1x8xf32, #tpu.memory_space<vmem>>, vector<1x1xf32>
    %53 = vector.shape_cast %52 : vector<1x1xf32> to vector<1x1xf32>
    %54 = vector.broadcast %53 : vector<1x1xf32> to vector<32x128xf32>
    %55 = arith.select %51, %54, %49 : vector<32x128xi1>, vector<32x128xf32>
    %c6_i32 = arith.constant 6 : i32
    %56 = vector.broadcast %c6_i32 : i32 to vector<32x128xi32>
    %57 = arith.cmpi eq, %5, %56 : vector<32x128xi32>
    %c0_14 = arith.constant 0 : index
    %c6 = arith.constant 6 : index
    %58 = vector.load %arg4[%c0_14, %c6] : memref<1x8xf32, #tpu.memory_space<vmem>>, vector<1x1xf32>
    %59 = vector.shape_cast %58 : vector<1x1xf32> to vector<1x1xf32>
    %60 = vector.broadcast %59 : vector<1x1xf32> to vector<32x128xf32>
    %61 = arith.select %57, %60, %55 : vector<32x128xi1>, vector<32x128xf32>
    %c7_i32_15 = arith.constant 7 : i32
    %62 = vector.broadcast %c7_i32_15 : i32 to vector<32x128xi32>
    %63 = arith.cmpi eq, %5, %62 : vector<32x128xi32>
    %c0_16 = arith.constant 0 : index
    %c7 = arith.constant 7 : index
    %64 = vector.load %arg4[%c0_16, %c7] : memref<1x8xf32, #tpu.memory_space<vmem>>, vector<1x1xf32>
    %65 = vector.shape_cast %64 : vector<1x1xf32> to vector<1x1xf32>
    %66 = vector.broadcast %65 : vector<1x1xf32> to vector<32x128xf32>
    %67 = arith.select %63, %66, %61 : vector<32x128xi1>, vector<32x128xf32>
    %68 = arith.mulf %14, %67 : vector<32x128xf32>
    %c0_17 = arith.constant 0 : index
    %c0_18 = arith.constant 0 : index
    %69 = vector.load %arg7[%c0_17, %c0_18] : memref<1x128xf32, #tpu.memory_space<vmem>>, vector<1x128xf32>
    %cst_19 = arith.constant dense<0.000000e+00> : vector<128xf32>
    %70 = vector.multi_reduction <add>, %68, %cst_19 [0] : vector<32x128xf32> to vector<128xf32>
    %71 = vector.shape_cast %70 : vector<128xf32> to vector<1x128xf32>
    %72 = arith.addf %69, %71 : vector<1x128xf32>
    %c0_20 = arith.constant 0 : index
    %c0_21 = arith.constant 0 : index
    %73 = vector.load %arg7[%c0_20, %c0_21] : memref<1x128xf32, #tpu.memory_space<vmem>>, vector<1x128xf32>
    tpu.vector_store %arg7[%c0_20, %c0_21], %72 {strides = array<i32>} : memref<1x128xf32, #tpu.memory_space<vmem>>, vector<1x128xf32>,
    %c0_22 = arith.constant 0 : index
    %c0_23 = arith.constant 0 : index
    %74 = vector.load %arg8[%c0_22, %c0_23] : memref<1x128xf32, #tpu.memory_space<vmem>>, vector<1x128xf32>
    %cst_24 = arith.constant dense<0.000000e+00> : vector<128xf32>
    %75 = vector.multi_reduction <add>, %18, %cst_24 [0] : vector<32x128xf32> to vector<128xf32>
    %76 = vector.shape_cast %75 : vector<128xf32> to vector<1x128xf32>
    %77 = arith.addf %74, %76 : vector<1x128xf32>
    %c0_25 = arith.constant 0 : index
    %c0_26 = arith.constant 0 : index
    %78 = vector.load %arg8[%c0_25, %c0_26] : memref<1x128xf32, #tpu.memory_space<vmem>>, vector<1x128xf32>
    tpu.vector_store %arg8[%c0_25, %c0_26], %77 {strides = array<i32>} : memref<1x128xf32, #tpu.memory_space<vmem>>, vector<1x128xf32>,
    %c0_i32_27 = arith.constant 0 : i32
    %79 = arith.cmpi eq, %arg1, %c0_i32_27 : i32
    %80 = arith.extui %79 : i1 to i32
    %c0_i32_28 = arith.constant 0 : i32
    %81 = arith.cmpi ne, %80, %c0_i32_28 : i32
    scf.if %81 {
      %c0_29 = arith.constant 0 : index
      %c0_30 = arith.constant 0 : index
      %82 = vector.load %arg7[%c0_29, %c0_30] : memref<1x128xf32, #tpu.memory_space<vmem>>, vector<1x128xf32>
      %83 = vector.shape_cast %82 : vector<1x128xf32> to vector<1x1x128xf32>
      %cst_31 = arith.constant dense<0.000000e+00> : vector<1xf32>
      %84 = vector.multi_reduction <add>, %83, %cst_31 [1, 2] : vector<1x1x128xf32> to vector<1xf32>
      %85 = vector.shape_cast %84 : vector<1xf32> to vector<1x1x1xf32>
      %86 = vector.extract %85[0, 0, 0] : f32 from vector<1x1x1xf32>
      %87 = vector.broadcast %86 : f32 to vector<1x1xf32>
      %c0_32 = arith.constant 0 : index
      %c0_33 = arith.constant 0 : index
      %c0_34 = arith.constant 0 : index
      %88 = vector.load %arg5[%c0_32, %c0_33, %c0_34] : memref<1x1x1xf32, #tpu.memory_space<vmem>>, vector<1x1x1xf32>
      %89 = vector.shape_cast %88 : vector<1x1x1xf32> to vector<1x1xf32>
      %90 = vector.shape_cast %87 : vector<1x1xf32> to vector<1x1x1xf32>
      tpu.vector_store %arg5[%c0_32, %c0_33, %c0_34], %90 {strides = array<i32>} : memref<1x1x1xf32, #tpu.memory_space<vmem>>, vector<1x1x1xf32>,
      %c0_35 = arith.constant 0 : index
      %c0_36 = arith.constant 0 : index
      %91 = vector.load %arg8[%c0_35, %c0_36] : memref<1x128xf32, #tpu.memory_space<vmem>>, vector<1x128xf32>
      %92 = vector.shape_cast %91 : vector<1x128xf32> to vector<1x1x128xf32>
      %cst_37 = arith.constant dense<0.000000e+00> : vector<1xf32>
      %93 = vector.multi_reduction <add>, %92, %cst_37 [1, 2] : vector<1x1x128xf32> to vector<1xf32>
      %94 = vector.shape_cast %93 : vector<1xf32> to vector<1x1x1xf32>
      %95 = vector.extract %94[0, 0, 0] : f32 from vector<1x1x1xf32>
      %96 = vector.broadcast %95 : f32 to vector<1x1xf32>
      %cst_38 = arith.constant 1.250000e-01 : f32
      %97 = vector.broadcast %cst_38 : f32 to vector<1x1xf32>
      %98 = arith.mulf %96, %97 : vector<1x1xf32>
      %c0_39 = arith.constant 0 : index
      %c0_40 = arith.constant 0 : index
      %c0_41 = arith.constant 0 : index
      %99 = vector.load %arg6[%c0_39, %c0_40, %c0_41] : memref<1x1x1xf32, #tpu.memory_space<vmem>>, vector<1x1x1xf32>
      %100 = vector.shape_cast %99 : vector<1x1x1xf32> to vector<1x1xf32>
      %101 = vector.shape_cast %98 : vector<1x1xf32> to vector<1x1x1xf32>
      tpu.vector_store %arg6[%c0_39, %c0_40, %c0_41], %101 {strides = array<i32>} : memref<1x1x1xf32, #tpu.memory_space<vmem>>, vector<1x1x1xf32>,
    } else {
    }
    return
  }
  func.func @transform_0(%arg0: i32, %arg1: i32) -> (i32, i32) {
    %c1_i32 = arith.constant 1 : i32
    %0 = arith.muli %arg0, %c1_i32 : i32
    %1 = arith.addi %0, %arg1 : i32
    %c0_i32 = arith.constant 0 : i32
    %c0_i32_0 = arith.constant 0 : i32
    return %1, %c0_i32 : i32, i32
  }
  func.func @transform_1(%arg0: i32, %arg1: i32) -> (i32, i32) {
    %c1_i32 = arith.constant 1 : i32
    %0 = arith.muli %arg0, %c1_i32 : i32
    %1 = arith.addi %0, %arg1 : i32
    %c0_i32 = arith.constant 0 : i32
    %c0_i32_0 = arith.constant 0 : i32
    return %1, %c0_i32 : i32, i32
  }
  func.func @transform_2(%arg0: i32, %arg1: i32) -> (i32, i32) {
    %c0_i32 = arith.constant 0 : i32
    %c0_i32_0 = arith.constant 0 : i32
    %c0_i32_1 = arith.constant 0 : i32
    return %c0_i32, %c0_i32_0 : i32, i32
  }
  func.func @transform_3(%arg0: i32, %arg1: i32) -> (i32, i32, i32) {
    %c0_i32 = arith.constant 0 : i32
    %c0_i32_0 = arith.constant 0 : i32
    %c0_i32_1 = arith.constant 0 : i32
    return %arg0, %c0_i32, %c0_i32_0 : i32, i32, i32
  }
  func.func @transform_4(%arg0: i32, %arg1: i32) -> (i32, i32, i32) {
    %c0_i32 = arith.constant 0 : i32
    %c0_i32_0 = arith.constant 0 : i32
    %c0_i32_1 = arith.constant 0 : i32
    return %arg0, %c0_i32, %c0_i32_0 : i32, i32, i32
  }
}

</mosaic_0001>

<bundles_post_ra>
// kernel: tpu_custom_call.1
= control target key start
LH: loop header
LB: loop body
LE: loop exit
PB: predicated region body
PF: predicated region fallthrough
CT: control target
= control target key end

     0   :  { %10 = vsyncpa [#allocation5], 0  ;;  %s1103_s0 = inlined_call_operand.hbm [shape: f32[64,128], index: 0, kind: input, shape index: {}]   ;;  %s1104_s1 = inlined_call_operand.hbm [shape: s8[64,128], index: 1, kind: input, shape index: {}]   ;;  %s1105_s2 = inlined_call_operand.vmem [shape: f32[1,8], index: 2, kind: input, shape index: {}]   ;;  %s1106_s3 = inlined_call_operand.vmem [shape: f32[2,1,1], index: 3, kind: output, shape index: {0}]   ;;  %s1107_s4 = inlined_call_operand.vmem [shape: f32[2,1,1], index: 4, kind: output, shape index: {1}]  }
   0x1   :  { %12 = vsyncpa [#allocation5 + $0x1], 0 }
   0x2   :  { %13 = vsyncpa [#allocation7], 0 }
   0x3   :  { %15 = vsyncpa [#allocation7 + $0x1], 0  ;;  %s867_s15 = smov 0   ;;  %s869_s16 = smov 0  }
   0x4   :  { %s871_s17 = smov 0   ;;  %s873_s18 = smov 0  }
   0x5   :  { %s875_s19 = smov 0   ;;  %s877_s20 = smov 0  }
   0x6 LB: > { %s607_s21 = sadd.s32 4294967295, %s829_s20   ;;  %s33_s22 = sadd.s32 1, %s825_s19  ;;  %s829_s20 = sphi %s877_s20, %s21_s20   ;;  %s825_s19 = sphi %s875_s19, %s1127_s19   ;;  %s821_s18 = sphi %s873_s18, %s1126_s18   ;;  %s817_s17 = sphi %s871_s17, %s1125_s17   ;;  %s813_s16 = sphi %s869_s16, %s1124_s16   ;;  %s809_s15 = sphi %s867_s15, %s1123_s15  }
   0x7   : > { %p35_p0 = scmp.ge.s32.totalorder %s33_s22, 2  ;;  %s42_s23 = sadd.s32 1, %s817_s17 }
   0x8   : > { %p49_p1 = scmp.ne.s32.totalorder %s817_s17, %s813_s16  ;;  %p50_p2 = scmp.eq.s32.totalorder %s829_s20, 0 }
   0x9   : > { %s1129_s22 = smov (%p35_p0, %s33_s22), 0  ;;  %p55_p4 = scmp.ne.s32.totalorder %s813_s16, %s809_s15 }
   0xa   : > { %p903_p3 = por %p50_p2, %p49_p1  ;;  %s39_s25 = ssub.s32 %s825_s19, %s1129_s22 }
   0xb   : > { %p56_p5 = scmp.eq.s32.totalorder %s607_s21, 0  ;;  %p40_p6 = scmp.eq.s32.totalorder %s39_s25, 0 }
   0xc   : > { %p645_p8 = scmp.lt.s32.totalorder %s829_s20, 2  ;;  %s183_s28 = sand.u32 1, %s817_s17  }
   0xd   : > { %p910_p7 = por %p56_p5, %p55_p4  ;;  %s629_s29 = sshll.u32 %s825_s19, 5 }
   0xe   : > { %s916_s27 = scalar_select %p40_p6, %s817_s17, %s42_s23  }
   0xf   : > { %s611_s30 = sshll.u32 %s183_s28, 5  ;;  %s193_s7 = scalar_lea.hbm %s1103_s0, %s629_s29 }
  0x10   : > { %s194_s8 = sshll.u32 %s193_s7, 4  ;;  %s187_s9 = scalar_lea.vmem [#allocation4], %s611_s30  ;;  %s195_s8 = int_to_ptr.hbm [resolvable:$true] %s194_s8 }
  0x11   : > { %s196_s10 = sshll.u32 %s187_s9, 4  ;;  %p925_p9 = pnand %p645_p8, %p903_p3  ;;  %s197_s10 = int_to_ptr.vmem [resolvable:$true] %s196_s10 }
  0x12   : > { %p616_p10 = scmp.ge.s32.totalorder %s829_s20, 1  ;;  %p224_p11 = scmp.lt.s32.totalorder %s829_s20, 3 }
  0x13   : > { %s184_s12 = scalar_lea.sflag [#allocation5], %s183_s28  ;;  %s831_s13 = smov 128  }
  0x14   : > { %s832_s14 = smov 8   ;;  %p225_p12 = pnand %p616_p10, %p224_p11 }
  0x15   : > { %641 = dma.hbm_to_vmem [thread:$0]  (!%p925_p9), %s195_s8, 512, %s197_s10, %s184_s12, %s831_s13, %s831_s13, %s832_s14  }
  0x16   : > { %s614_s15 = sshll.u32 %s183_s28, 3  ;;  %s615_s21 = sshll.u32 %s825_s19, 3 }
  0x17   : > { %s215_s24 = scalar_lea.hbm %s1104_s1, %s615_s21  ;;  %s210_s30 = scalar_lea.vmem [#allocation6], %s614_s15 }
  0x18   : > { %s217_s29 = sshll.u32 %s215_s24, 4  ;;  %s219_s5 = sshll.u32 %s210_s30, 4  ;;  %s218_s29 = int_to_ptr.hbm [resolvable:$true] %s217_s29  ;;  %s220_s5 = int_to_ptr.vmem [resolvable:$true] %s219_s5 }
  0x19   : > { %s207_s6 = scalar_lea.sflag [#allocation7], %s183_s28  ;;  %228 = sbr.rel (%p225_p12) target bundleno = 385 (0x181), region = 32 }
  0x1a   : > { %644 = dma.hbm_to_vmem [thread:$0]  (!%p925_p9), %s218_s29, 128, %s220_s5, %s207_s6  }
  0x1b   : > { %s230_s7 = sand.u32 (!%p225_p12), 1, %s813_s16  }
  0x1c   : > { %s617_s8 = sshll.u32 (!%p225_p12), %s230_s7, 5  ;;  %s231_s9 = scalar_lea.sflag (!%p225_p12), [#allocation5], %s230_s7 }
  0x1d   : > { %s940_s10 = scalar_lea.vmem (!%p225_p12), [#allocation4], %s617_s8 }
  0x1e   : > { %800 = dma.done.wait (%p910_p7), %s231_s9, 512  }
  0x1f   : > { %802 = vsyncadd (%p910_p7), %s231_s9, 4294966784  ;;  %s618_s12 = sshll.u32 %s230_s7, 3  ;;  %s241_s13 = scalar_lea.sflag [#allocation7], %s230_s7 }
  0x20   : > { %s244_s14 = scalar_lea.vmem [#allocation6], %s618_s12 }
  0x21   : > { %804 = dma.done.wait (%p910_p7), %s241_s13, 128  }
  0x22   : > { %806 = vsyncadd (%p910_p7), %s241_s13, 4294967168  ;;  %v833_v0 = vmov 2   ;;  %v834_v1 = vmov 0   ;;  %v835_v2 = vmov 4   ;;  %v714_v3 = vld [vmem:[%s1105_s2] ss:$0 sm:$0xff]  ;;  %v300_v21 = vlaneseq }
  0x23   : > { %707 = vset.pattern.permute.xlu1 %v833_v0  ;;  %705 = vset.pattern.permute.xlu0 %v834_v1  ;;  %v836_v4 = vmov 3   ;;  %v837_v5 = vmov 1   ;;  %v838_v6 = vmov 5   ;;  %v839_v7 = vmov 6   ;;  %v295_v9 = vld [vmem:[%s244_s14] sm:$0xff]  ;;  %v293_v33 = vld [vmem:[%s940_s10 + $0x10] sm:$0xff] }
  0x24   : > { %709 = vset.pattern.permute.xlu2 %v835_v2  ;;  %363 = vperm.xlu1 %707, %v714_v3   ;;  %v840_v8 = vmov 7   ;;  %v953_v10 = vunpack.c.0.s8 %v295_v9  ;;  %v955_v11 = vunpack.c.1.s8 %v295_v9  ;;  %v841_v12 = vmov 0.0   ;;  %v291_v31 = vld [vmem:[%s940_s10] sm:$0xff]  ;;  %v292_v32 = vld [vmem:[%s940_s10 + $0x8] sm:$0xff]  ;;  %v294_v34 = vld [vmem:[%s940_s10 + $0x18] sm:$0xff]  ;;  %p279_p13 = scmp.lt.s32.totalorder %s821_s18, 1 }
  0x25   : > { %339 = vperm.xlu0 %705, %v714_v3   ;;  %387 = vperm.xlu2 %709, %v714_v3   ;;  %289 = vst [vmem:[#allocation2] sm:$0x1] %v841_v12  ;;  %v957_v13 = vunpack.c.2.s8 %v295_v9  ;;  %v961_v14 = vunpack.c.3.s8 %v295_v9  ;;  %v301_v25 = vand.u32 127, %v300_v21  ;;  %v619_v36 = vadd.f32 -1.0, %v291_v31 }
  0x26   : > { %290 = vst [vmem:[#allocation3] sm:$0x1] %v841_v12  ;;  %vm319_vm0 = vcmp.ge.s32.totalorder %v953_v10, 0  ;;  %vm320_vm1 = vcmp.ge.s32.totalorder %v955_v11, 0  ;;  %vm331_vm4 = vcmp.eq.s32.totalorder %v953_v10, 0  ;;  %vm332_vm5 = vcmp.eq.s32.totalorder %v955_v11, 0 }
  0x27   : > { %vm321_vm2 = vcmp.ge.s32.totalorder %v957_v13, 0  ;;  %v623_v15 = vsel %vm319_vm0, 1.0, %v841_v12  ;;  %v624_v16 = vsel %vm320_vm1, 1.0, %v841_v12  ;;  %vm322_vm3 = vcmp.ge.s32.totalorder %v961_v14, 0  ;;  %s1131_s18 = smov (!%p279_p13, %s821_s18), 1 }
  0x28   : > { %v625_v17 = vsel %vm321_vm2, 1.0, %v841_v12  ;;  %v447_v18 = vadd.f32 %v624_v16, %v623_v15  ;;  %v626_v19 = vsel %vm322_vm3, 1.0, %v841_v12  ;;  %vm333_vm6 = vcmp.eq.s32.totalorder %v957_v13, 0  ;;  %s281_s21 = scalar_lea.vmem %s1106_s3, %s1131_s18  ;;  %s284_s30 = scalar_lea.vmem %s1107_s4, %s1131_s18 }
  0x29   : > { %vm334_vm7 = vcmp.eq.s32.totalorder %v961_v14, 0  ;;  %vm346_vm8 = vcmp.eq.s32.totalorder %v953_v10, 1  ;;  %vm347_vm9 = vcmp.eq.s32.totalorder %v955_v11, 1  ;;  %vm348_vm10 = vcmp.eq.s32.totalorder %v957_v13, 1 }
  0x2a   : > { %v448_v20 = vadd.f32 %v625_v17, %v447_v18  ;;  %v302_v30 = vand.u32 7, %v301_v25  ;;  %vm382_vm13 = vcmp.eq.s32.totalorder %v953_v10, 4  ;;  %vm383_vm14 = vcmp.eq.s32.totalorder %v955_v11, 4 }
  0x2b   : > { %vm395_vm0 = vcmp.eq.s32.totalorder %v955_v11, 5  ;;  %vm396_vm11 = vcmp.eq.s32.totalorder %v957_v13, 5  ;;  %vm397_vm2 = vcmp.eq.s32.totalorder %v961_v14, 5  ;;  %v620_v39 = vadd.f32 -1.0, %v292_v32 }
  0x2c   : > { %708 = vset.pattern.permute.xlu1 %v836_v4  ;;  %v449_v22 = vadd.f32 %v626_v19, %v448_v20  ;;  %vm303_vm3 = vcmp.eq.s32.totalorder %v953_v10, %v302_v30  ;;  %v621_v40 = vadd.f32 -1.0, %v293_v33  ;;  %v622_v41 = vadd.f32 -1.0, %v294_v34 }
  0x2d   : > { %706 = vset.pattern.permute.xlu0 %v837_v5  ;;  %375 = vperm.xlu1 %708, %v714_v3   ;;  %vm304_vm15 = vcmp.eq.s32.totalorder %v955_v11, %v302_v30  ;;  %vm305_vm12 = vcmp.eq.s32.totalorder %v957_v13, %v302_v30  ;;  %vm306_vm1 = vcmp.eq.s32.totalorder %v961_v14, %v302_v30  ;;  %v446_v61 = vld [vmem:[#allocation3] sm:$0x1] }
  0x2e   : > { %351 = vperm.xlu0 %706, %v714_v3   ;;  %710 = vset.pattern.permute.xlu2 %v838_v6  ;;  %v450_v24 = vrot.slane %v449_v22, 4  ;;  %v311_v62 = vsel %vm303_vm3, %v619_v36, %v291_v31  ;;  %v312_v63 = vsel %vm304_vm15, %v620_v39, %v292_v32  ;;  %v313_v0 = vsel %vm305_vm12, %v621_v40, %v293_v33  ;;  %v434_v40 = vld [vmem:[#allocation2] sm:$0x1] }
  0x2f   : > { %399 = vperm.xlu2 %710, %v714_v3   ;;  %v314_v2 = vsel %vm306_vm1, %v622_v41, %v294_v34  ;;  %vm1120_vm12 = vcmp.eq.s32.totalorder %v957_v13, 4  ;;  %vm1121_vm15 = vcmp.eq.s32.totalorder %v961_v14, 4  ;;  %v317_v9 = vmul.f32 %v313_v0, %v313_v0 }
  0x30   : > { %v451_v28 = vadd.f32 %v450_v24, %v449_v22  ;;  %vm418_vm1 = vcmp.eq.s32.totalorder %v953_v10, 7  ;;  %vm419_vm3 = vcmp.eq.s32.totalorder %v955_v11, 7 }
  0x32   : > { %v452_v29 = vrot.slane %v451_v28, 2 }
  0x34   : > { %v453_v35 = vadd.f32 %v452_v29, %v451_v28 }
  0x35   : > { %711 = vset.pattern.permute.xlu1 %v839_v7  ;;  %v315_v7 = vmul.f32 %v311_v62, %v311_v62 }
  0x36   : > { %713 = vset.pattern.permute.xlu0 %v840_v8  ;;  %411 = vperm.xlu1 %711, %v714_v3   ;;  %v454_v37 = vrot.slane %v453_v35, 1 }
  0x37   : > { %712 = vset.pattern.permute.xlu2 %v840_v8  ;;  %v316_v8 = vmul.f32 %v312_v63, %v312_v63 }
  0x38   : > { %423 = vperm.xlu2 %712, %v714_v3   ;;  %v455_v48 = vadd.f32 %v454_v37, %v453_v35 }
  0x3a   : > { %v456_v6 = vadd.f32 %v455_v48, %v446_v61 }
  0x3c   : > { %457 = vst [vmem:[#allocation3] sm:$0x1] %v456_v6 }
  0x43   : > { %v476_v32 = vld [vmem:[#allocation3] sm:$0x1] }
  0x7f   : > { %v965_v23 = vpop.permute.xlu2 %387 }
  0x89   : > { %v400_v38 = vpop.permute.xlu2 %399 }
  0x92   : > { %v424_v12 = vpop.permute.xlu2 %423 }
  0x96   : > { %v364_v26 = vpop.permute.xlu1 %363 }
  0x97   : > { %v340_v27 = vpop.permute.xlu0 %339 }
  0x98   : > { %v342_v42 = vsel %vm331_vm4, %v340_v27, 0.0  ;;  %v343_v43 = vsel %vm332_vm5, %v340_v27, 0.0  ;;  %v344_v44 = vsel %vm333_vm6, %v340_v27, 0.0  ;;  %v345_v45 = vsel %vm334_vm7, %v340_v27, 0.0 }
  0x99   : > { %vm1111_vm4 = vcmp.eq.s32.totalorder %v961_v14, 1  ;;  %vm1112_vm5 = vcmp.eq.s32.totalorder %v953_v10, 2  ;;  %vm1113_vm6 = vcmp.eq.s32.totalorder %v955_v11, 2  ;;  %vm1114_vm7 = vcmp.eq.s32.totalorder %v957_v13, 2 }
  0x9a   : > { %v318_v27 = vmul.f32 %v314_v2, %v314_v2 }
  0x9f   : > { %v376_v46 = vpop.permute.xlu1 %375 }
  0xa0   : > { %v352_v47 = vpop.permute.xlu0 %351 }
  0xa1   : > { %v354_v49 = vsel %vm346_vm8, %v352_v47, %v342_v42  ;;  %v355_v50 = vsel %vm347_vm9, %v352_v47, %v343_v43  ;;  %v356_v51 = vsel %vm348_vm10, %v352_v47, %v344_v44  ;;  %v357_v52 = vsel %vm1111_vm4, %v352_v47, %v345_v45 }
  0xa2   : > { %v366_v53 = vsel %vm1112_vm5, %v364_v26, %v354_v49  ;;  %v367_v54 = vsel %vm1113_vm6, %v364_v26, %v355_v50  ;;  %v368_v55 = vsel %vm1114_vm7, %v364_v26, %v356_v51  ;;  %vm1115_vm8 = vcmp.eq.s32.totalorder %v961_v14, 2 }
  0xa3   : > { %v369_v56 = vsel %vm1115_vm8, %v364_v26, %v357_v52  ;;  %vm1116_vm9 = vcmp.eq.s32.totalorder %v953_v10, 3  ;;  %vm1117_vm10 = vcmp.eq.s32.totalorder %v955_v11, 3  ;;  %vm1118_vm4 = vcmp.eq.s32.totalorder %v957_v13, 3 }
  0xa4   : > { %v378_v57 = vsel %vm1116_vm9, %v376_v46, %v366_v53  ;;  %v379_v58 = vsel %vm1117_vm10, %v376_v46, %v367_v54  ;;  %v380_v59 = vsel %vm1118_vm4, %v376_v46, %v368_v55  ;;  %vm1119_vm5 = vcmp.eq.s32.totalorder %v961_v14, 3 }
  0xa5   : > { %v381_v60 = vsel %vm1119_vm5, %v376_v46, %v369_v56  ;;  %vm406_vm6 = vcmp.eq.s32.totalorder %v953_v10, 6  ;;  %v390_v1 = vsel %vm382_vm13, %v965_v23, %v378_v57  ;;  %vm407_vm7 = vcmp.eq.s32.totalorder %v955_v11, 6 }
  0xa6   : > { %vm408_vm8 = vcmp.eq.s32.totalorder %v957_v13, 6  ;;  %v391_v3 = vsel %vm383_vm14, %v965_v23, %v379_v58  ;;  %v392_v4 = vsel %vm1120_vm12, %v965_v23, %v380_v59  ;;  %v393_v5 = vsel %vm1121_vm15, %v965_v23, %v381_v60 }
  0xa7   : > { %vm409_vm13 = vcmp.eq.s32.totalorder %v961_v14, 6  ;;  %vm420_vm14 = vcmp.eq.s32.totalorder %v957_v13, 7  ;;  %vm421_vm9 = vcmp.eq.s32.totalorder %v961_v14, 7  ;;  %vm1122_vm10 = vcmp.eq.s32.totalorder %v953_v10, 5 }
  0xa8   : > { %v402_v15 = vsel %vm1122_vm10, %v400_v38, %v390_v1  ;;  %v403_v16 = vsel %vm395_vm0, %v400_v38, %v391_v3  ;;  %v404_v17 = vsel %vm396_vm11, %v400_v38, %v392_v4  ;;  %v405_v18 = vsel %vm397_vm2, %v400_v38, %v393_v5  ;;  %v412_v19 = vpop.permute.xlu1 %411 }
  0xa9   : > { %v414_v20 = vsel %vm406_vm6, %v412_v19, %v402_v15  ;;  %v415_v21 = vsel %vm407_vm7, %v412_v19, %v403_v16  ;;  %v416_v22 = vsel %vm408_vm8, %v412_v19, %v404_v17  ;;  %v417_v23 = vsel %vm409_vm13, %v412_v19, %v405_v18 }
  0xaa   : > { %v426_v24 = vsel %vm418_vm1, %v424_v12, %v414_v20  ;;  %v427_v25 = vsel %vm419_vm3, %v424_v12, %v415_v21  ;;  %v428_v26 = vsel %vm420_vm14, %v424_v12, %v416_v22  ;;  %v429_v30 = vsel %vm421_vm9, %v424_v12, %v417_v23 }
  0xab   : > { %v430_v28 = vmul.f32 %v426_v24, %v315_v7  ;;  %v431_v29 = vmul.f32 %v427_v25, %v316_v8  ;;  %vm462_vm11 = vcmask 1040384   ;;  %v432_v31 = vmul.f32 %v428_v26, %v317_v9 }
  0xac   : > { %v433_v33 = vmul.f32 %v429_v30, %v318_v27  ;;  %v477_v34 = vsel %vm462_vm11, %v476_v32, 0.0  ;;  %vm474_vm0 = vcmask 0  }
  0xad   : > { %v435_v10 = vadd.f32 %v431_v29, %v430_v28  ;;  %478 = vadd.xlane.f32.xlu1 %v477_v34 }
  0xaf   : > { %v436_v11 = vadd.f32 %v435_v10, %v432_v31 }
  0xb1   : > { %v437_v13 = vadd.f32 %v436_v11, %v433_v33 }
  0xb3   : > { %v438_v35 = vrot.slane %v437_v13, 4 }
  0xb5   : > { %v439_v36 = vadd.f32 %v438_v35, %v437_v13 }
  0xb7   : > { %v440_v37 = vrot.slane %v439_v36, 2 }
  0xb9   : > { %v441_v38 = vadd.f32 %v440_v37, %v439_v36 }
  0xbb   : > { %v442_v39 = vrot.slane %v441_v38, 1 }
  0xbd   : > { %v443_v41 = vadd.f32 %v442_v39, %v441_v38 }
  0xbf   : > { %v444_v42 = vadd.f32 %v443_v41, %v434_v40 }
  0xc1   : > { %445 = vst [vmem:[#allocation2] sm:$0x1] %v444_v42 }
  0xc8   : > { %v461_v14 = vld [vmem:[#allocation2] sm:$0x1] }
  0xc9   : > { %v463_v43 = vsel %vm462_vm11, %v461_v14, 0.0 }
  0xca   : > { %464 = vadd.xlane.f32.xlu0 %v463_v43 }
 0x120   : > { %v479_v44 = vpop.xlane.xlu1 %478 }
 0x121   : > { %v480_v45 = vrot.slane %v479_v44, 4 }
 0x123   : > { %v481_v46 = vadd.f32 %v480_v45, %v479_v44 }
 0x125   : > { %v482_v47 = vrot.slane %v481_v46, 2 }
 0x127   : > { %v483_v51 = vadd.f32 %v482_v47, %v481_v46 }
 0x129   : > { %v484_v54 = vrot.slane %v483_v51, 1 }
 0x12b   : > { %v485_v57 = vadd.f32 %v484_v54, %v483_v51 }
 0x13d   : > { %v465_v48 = vpop.xlane.xlu0 %464 }
 0x13e   : > { %v466_v49 = vrot.slane %v465_v48, 4 }
 0x140   : > { %v467_v50 = vadd.f32 %v466_v49, %v465_v48 }
 0x142   : > { %v468_v52 = vrot.slane %v467_v50, 2 }
 0x144   : > { %v469_v53 = vadd.f32 %v468_v52, %v467_v50 }
 0x146   : > { %v470_v55 = vrot.slane %v469_v53, 1 }
 0x148   : > { %v471_v56 = vadd.f32 %v470_v55, %v469_v53 }
 0x14a   : > { %630 = vpush %v471_v56 }
 0x14b   : > { %632 = vpush %v485_v57 }
 0x17b   : > { %s631_s23 = spop %630 }
 0x17c   : > { %v473_v58 = vstv %s631_s23  ;;  %s633_s25 = spop %632 }
 0x17d   : > { %475 = vst.msk [vmem:[%s281_s21] sm:$0x1] %vm474_vm0, %v473_v58  ;;  %v487_v59 = vstv %s633_s25 }
 0x17e   : > { %v488_v60 = vmul.f32 0.125, %v487_v59 }
 0x180   : > { %489 = vst.msk [vmem:[%s284_s30] sm:$0x1] %vm474_vm0, %v488_v60 }
 0x181 PF: > { %s21_s20 = sadd.s32 1, %s829_s20   ;;  %s1123_s15 = smov %s813_s16 }
 0x182   : > { %p18_p0 = scmp.ge.s32.totalorder %s21_s20, 4   ;;  %s1124_s16 = smov %s817_s17 }
 0x183   : > { %s1125_s17 = smov %s916_s27  ;;  %s1126_s18 = smov %s825_s19 }
 0x184   : > { %s1127_s19 = smov %s1129_s22  ;;  %20 = sbr.rel (!%p18_p0) target bundleno = 6 (0x6), region = 105 }
 0x189   :  { %519 = vsyncpa [#allocation5], 1 }
 0x18a   :  { %521 = vsyncpa [#allocation5 + $0x1], 1 }
 0x18b   :  { %522 = vsyncpa [#allocation7], 1 }
 0x18c   :  { %524 = vsyncpa [#allocation7 + $0x1], 1 }

</bundles_post_ra>
